<compile_context>
chip_gen: v7x
topology: tpu7x:2x2x1
jax: 0.10.0
libtpu: 0.0.40
codegen_flags: <defaults>
</compile_context>

<pallas_src>
import jax
import jax.numpy as jnp
from jax import lax
from jax.experimental import pallas as pl
from jax.experimental.pallas import tpu as pltpu


def _round_up(x, m):
    return -(-x // m) * m


def _vmem_cap_bytes():
    """Physical VMEM per TensorCore; conservative fallback (v7x = 64 MiB)."""
    try:
        return int(pltpu.get_tpu_info().vmem_capacity_bytes)
    except Exception:
        return 64 << 20


def _pick_tile(batch, tb):
    """Pick the batch-tile (lane) width and the padded batch size.

    Tiles are multiples of 128 (lane-dense vregs, unmasked stores), as large
    as possible up to `tb`, but we aim for >= 2 grid blocks so the "parallel"
    batch axis can shard across v7x's two TensorCores.
    """
    assert tb % 128 == 0 and tb > 0, "batch tile must be a multiple of 128"
    b128 = _round_up(batch, 128)
    if b128 <= 128:
        tile = 128                      # small-batch: one full lane group
    else:
        nb_target = max(2, -(-b128 // tb))
        tile = min(tb, _round_up(-(-b128 // nb_target), 128))
    return tile, _round_up(b128, tile)


def _pack_small(vectors):
    """Pack tiny 1-D f32 vectors into one (R, 1) column at 8-aligned offsets.

    Collapses the per-bias BlockSpecs/DMAs into a single VMEM-resident input;
    the kernel slices it with static, sublane-aligned slices.
    """
    segs, offs, r = [], [], 0
    for v in vectors:
        col = jnp.asarray(v, jnp.float32).reshape(-1, 1)
        offs.append(r)
        segs.append(col)
        r += col.shape[0]
        pad = (-r) % 8
        if pad:
            segs.append(jnp.zeros((pad, 1), jnp.float32))
            r += pad
    return jnp.concatenate(segs, axis=0), tuple(offs)


def _make_ncf_kernel(F, H1, H2, H3, o_b1, o_b2, o_b3, o_wph, o_bp):
    """NCF forward over one (TB, 2F+2M) batch-major activation block."""

    def kernel(act_ref, w1_ref, w2_ref, w3_ref, wpg_ref, sv_ref, out_ref):
        cdt = act_ref.dtype
        dn = (((1,), (1,)), ((), ()))      # contract last dims: A @ X^T on MXU

        act = act_ref[...]                 # (TB, 2F+2M), batch-major slab
        ug = act[:, 0:F]                   # GMF user embedding  (TB, F)
        ig = act[:, F:2 * F]               # GMF item embedding  (TB, F)
        x = act[:, 2 * F:]                 # concat(um, im)      (TB, 2M)

        # GMF branch: elementwise product on the VPU.
        gmf = ug * ig

        # TODO(synk): nn.Dropout layers are identity at inference; omitted.

        # MLP tower.  Intermediates are feature-major (H, TB) so the batch
        # stays on the 128-lane axis; layer 1 consumes the batch-major slab
        # directly via a transposed-RHS contraction (no wrapper .T), and the
        # folded torch.cat means a single (H1, 2M) weight push.
        h = lax.dot_general(w1_ref[...], x, dn,
                            preferred_element_type=jnp.float32)
        h = jnp.maximum(h + sv_ref[o_b1:o_b1 + H1, :], 0.0)

        h = jnp.dot(w2_ref[...], h.astype(cdt),
                    preferred_element_type=jnp.float32)
        h = jnp.maximum(h + sv_ref[o_b2:o_b2 + H2, :], 0.0)

        h = jnp.dot(w3_ref[...], h.astype(cdt),
                    preferred_element_type=jnp.float32)
        h = jnp.maximum(h + sv_ref[o_b3:o_b3 + H3, :], 0.0)   # (H3, TB), f32

        # Predict layer: wp . concat(gmf, mlp_out) + bp, split into the GMF
        # half (tiny transposed-RHS matmul -> lane-dense (1, TB)) and the MLP
        # half (VPU multiply + sublane reduction).
        pred_g = lax.dot_general(wpg_ref[...], gmf, dn,
                                 preferred_element_type=jnp.float32)
        pred_m = jnp.sum(h * sv_ref[o_wph:o_wph + H3, :], axis=0,
                         keepdims=True)
        out_ref[...] = pred_g + pred_m + sv_ref[o_bp:o_bp + 1, :]

    return kernel


def ncf_pallas(act, w1, w2, w3, wpg, small, dims, offs, *, tile):
    """Run the NCF kernel over a (Bp, 2F+2M) packed activation slab."""
    Bp, D = act.shape
    nb = Bp // tile
    F, H1, H2, H3 = dims
    kernel = _make_ncf_kernel(F, H1, H2, H3, *offs)

    resident = lambda a: pl.BlockSpec(a.shape, lambda i: (0, 0))
    weights = (w1, w2, w3, wpg, small)
    w_bytes = sum(int(a.size) * a.dtype.itemsize for a in weights)
    act_blk = tile * _round_up(D, 128) * act.dtype.itemsize
    # Never exceed 3/4 of physical per-core VMEM (v7x has only 64 MiB).
    vmem_limit = int(min(_vmem_cap_bytes() * 3 // 4,
                         max(32 << 20, 6 * act_blk + 2 * w_bytes)))

    K1 = D - 2 * F
    cost = pl.CostEstimate(
        flops=int(2 * Bp * (K1 * H1 + H1 * H2 + H2 * H3 + F)
                  + Bp * (F + H1 + H2 + 2 * H3 + 2)),
        transcendentals=0,
        bytes_accessed=int(Bp * D * act.dtype.itemsize + w_bytes + Bp * 4),
    )

    out = pl.pallas_call(
        kernel,
        out_shape=jax.ShapeDtypeStruct((1, Bp), jnp.float32),
        grid_spec=pltpu.PrefetchScalarGridSpec(
            num_scalar_prefetch=0,
            grid=(nb,),
            in_specs=[pl.BlockSpec((tile, D), lambda i: (i, 0))]
                     + [resident(a) for a in weights],
            out_specs=pl.BlockSpec((1, tile), lambda i: (0, i)),
        ),
        compiler_params=pltpu.CompilerParams(
            dimension_semantics=("parallel",),
            vmem_limit_bytes=vmem_limit,
        ),
        cost_estimate=cost,
    )(act, *weights)
    return out[0]


def ncf_forward(params, user, item, *, tb=4096, compute_dtype=jnp.float32):
    """NCF.forward(user, item) -> (B,) predictions.

    Run under jax.jit so the embedding gathers, the slab concat and the dtype
    cast fuse into a single HBM materialization (no transpose / pad passes).
    """
    B = int(user.shape[0])
    tile, Bp = _pick_tile(B, tb)
    pad = Bp - B
    if pad:                               # pad cheap index vectors, not activations
        user = jnp.pad(user, (0, pad))
        item = jnp.pad(item, (0, pad))

    # TODO(synk): for production-sized embedding tables, move the gather
    # in-kernel (scalar-prefetched indices + manual DMA from HBM tables).
    ug = params["embed_user_GMF"][user]   # (Bp, F)
    ig = params["embed_item_GMF"][item]   # (Bp, F)
    um = params["embed_user_MLP"][user]   # (Bp, M)
    im = params["embed_item_MLP"][item]   # (Bp, M)
    # Single batch-major activation slab [ug | ig | um | im] -> (Bp, 2F+2M).
    act = jnp.concatenate([ug, ig, um, im], axis=1).astype(compute_dtype)

    # Kernel is specialized to the 3-layer MLP tower of the demo config.
    (w1, b1), (w2, b2), (w3, b3) = params["mlp"]
    F = ug.shape[1]
    H1, H2, H3 = b1.shape[0], b2.shape[0], b3.shape[0]
    wp = params["wp"]
    wpg = wp[:, :F]                       # (1, F)  GMF half of predict weight
    wph = wp[0, F:]                       # (H3,)   MLP half of predict weight
    small, offs = _pack_small([b1, b2, b3, wph, params["bp"].reshape(-1)])

    cdt = compute_dtype
    pred = ncf_pallas(act, w1.astype(cdt), w2.astype(cdt), w3.astype(cdt),
                      wpg.astype(cdt), small, (F, H1, H2, H3), offs, tile=tile)
    return pred[:B]                       # == prediction.view(-1)


def init_params(key, user_num, item_num, factor_num, num_layers):
    """Synthetic init mirroring NCF._init_weight_ (torch-native shapes)."""
    ks = jax.random.split(key, 4 + num_layers + 1)
    mlp_dim = factor_num * 2 ** (num_layers - 1)
    p = {}
    p["embed_user_GMF"] = 0.01 * jax.random.normal(ks[0], (user_num, factor_num), jnp.float32)
    p["embed_item_GMF"] = 0.01 * jax.random.normal(ks[1], (item_num, factor_num), jnp.float32)
    p["embed_user_MLP"] = 0.01 * jax.random.normal(ks[2], (user_num, mlp_dim), jnp.float32)
    p["embed_item_MLP"] = 0.01 * jax.random.normal(ks[3], (item_num, mlp_dim), jnp.float32)

    mlp = []
    for i in range(num_layers):
        in_size = factor_num * 2 ** (num_layers - i)
        out_size = in_size // 2
        bound = (6.0 / (in_size + out_size)) ** 0.5      # xavier_uniform
        w = jax.random.uniform(ks[4 + i], (out_size, in_size), jnp.float32,
                               minval=-bound, maxval=bound)
        mlp.append((w, jnp.zeros((out_size,), jnp.float32)))
    p["mlp"] = mlp

    predict_in = factor_num * 2
    kb = (3.0 / predict_in) ** 0.5                       # kaiming_uniform(a=1)
    p["wp"] = jax.random.uniform(ks[4 + num_layers], (1, predict_in), jnp.float32,
                                 minval=-kb, maxval=kb)
    p["bp"] = jnp.zeros((1,), jnp.float32)
    return p


def ncf_reference(params, user, item):
    """Pure-JAX mirror of the PyTorch forward (for validation)."""
    ug = params["embed_user_GMF"][user]
    ig = params["embed_item_GMF"][item]
    um = params["embed_user_MLP"][user]
    im = params["embed_item_MLP"][item]
    gmf = ug * ig
    x = jnp.concatenate([um, im], axis=-1)
    for w, b in params["mlp"]:
        x = jnp.maximum(x @ w.T + b, 0.0)
    c = jnp.concatenate([gmf, x], axis=-1)
    return (c @ params["wp"].T + params["bp"]).reshape(-1)


if __name__ == "__main__":
    user_num, item_num = 32, 48
    factor_num, num_layers = 8, 3

    key = jax.random.PRNGKey(0)
    kp, ku, ki = jax.random.split(key, 3)
    params = init_params(kp, user_num, item_num, factor_num, num_layers)

    fwd = jax.jit(ncf_forward, static_argnames=("tb", "compute_dtype"))

    # Small batch: padded up to one full 128-lane block (single grid step).
    batch = 8
    user = jax.random.randint(ku, (batch,), 0, user_num, dtype=jnp.int32)
    item = jax.random.randint(ki, (batch,), 0, item_num, dtype=jnp.int32)
    out = jax.block_until_ready(fwd(params, user, item))
    ref = jax.block_until_ready(ncf_reference(params, user, item))
    assert out.shape == (batch,)
    assert jnp.allclose(out, ref, atol=1e-5, rtol=1e-5), (out, ref)

    # Larger batch: exercises the multi-block batch grid (2 tiles of 128).
    batch2 = 200
    ku2, ki2 = jax.random.split(jax.random.PRNGKey(1))
    user2 = jax.random.randint(ku2, (batch2,), 0, user_num, dtype=jnp.int32)
    item2 = jax.random.randint(ki2, (batch2,), 0, item_num, dtype=jnp.int32)
    out2 = jax.block_until_ready(fwd(params, user2, item2))
    ref2 = jax.block_until_ready(ncf_reference(params, user2, item2))
    assert out2.shape == (batch2,)
    assert jnp.allclose(out2, ref2, atol=1e-5, rtol=1e-5), (out2, ref2)

    # bf16 activations/weights (halves HBM bytes on v6e/v7x); f32 accumulation.
    out3 = jax.block_until_ready(fwd(params, user2, item2,
                                     compute_dtype=jnp.bfloat16))
    assert out3.shape == (batch2,)
    assert jnp.allclose(out3, ref2, atol=3e-3, rtol=2e-2), (out3, ref2)

    print("KERNEL_OK")
</pallas_src>

<mosaic_0001>
module attributes {stable_mosaic.version = 11 : i64} {
  func.func @kernel(%arg0: i32, %arg1: memref<128x80xf32, #tpu.memory_space<vmem>>, %arg2: memref<32x64xf32, #tpu.memory_space<vmem>>, %arg3: memref<16x32xf32, #tpu.memory_space<vmem>>, %arg4: memref<8x16xf32, #tpu.memory_space<vmem>>, %arg5: memref<1x8xf32, #tpu.memory_space<vmem>>, %arg6: memref<72x1xf32, #tpu.memory_space<vmem>>, %arg7: memref<1x128xf32, #tpu.memory_space<vmem>>) attributes {dimension_semantics = [#tpu.dimension_semantics<parallel>], iteration_bounds = array<i64: 1>, scalar_prefetch = 0 : i64, scratch_operands = 0 : i64, tpu.core_type = #tpu.core_type<tc>, window_params = [{transform_indices = @transform_0, window_bounds = array<i64: 128, 80>}, {pipeline_mode = #tpu.pipeline_mode<synchronous>, transform_indices = @transform_1, window_bounds = array<i64: 32, 64>}, {pipeline_mode = #tpu.pipeline_mode<synchronous>, transform_indices = @transform_2, window_bounds = array<i64: 16, 32>}, {pipeline_mode = #tpu.pipeline_mode<synchronous>, transform_indices = @transform_3, window_bounds = array<i64: 8, 16>}, {pipeline_mode = #tpu.pipeline_mode<synchronous>, transform_indices = @transform_4, window_bounds = array<i64: 1, 8>}, {pipeline_mode = #tpu.pipeline_mode<synchronous>, transform_indices = @transform_5, window_bounds = array<i64: 72, 1>}, {transform_indices = @transform_6, window_bounds = array<i64: 1, 128>}]} {
    %c0 = arith.constant 0 : index
    %c0_0 = arith.constant 0 : index
    %0 = vector.load %arg1[%c0, %c0_0] : memref<128x80xf32, #tpu.memory_space<vmem>>, vector<128x80xf32>
    %1 = vector.extract_strided_slice %0 {offsets = [0, 0], sizes = [128, 8], strides = [1, 1]} : vector<128x80xf32> to vector<128x8xf32>
    %2 = vector.extract_strided_slice %0 {offsets = [0, 8], sizes = [128, 8], strides = [1, 1]} : vector<128x80xf32> to vector<128x8xf32>
    %3 = vector.extract_strided_slice %0 {offsets = [0, 16], sizes = [128, 64], strides = [1, 1]} : vector<128x80xf32> to vector<128x64xf32>
    %4 = arith.mulf %1, %2 : vector<128x8xf32>
    %c0_1 = arith.constant 0 : index
    %c0_2 = arith.constant 0 : index
    %5 = vector.load %arg2[%c0_1, %c0_2] : memref<32x64xf32, #tpu.memory_space<vmem>>, vector<32x64xf32>
    %cst = arith.constant dense<0.000000e+00> : vector<32x128xf32>
    %6 = tpu.matmul %5, %3, %cst {dimension_numbers = #tpu.dot_dimension_numbers<[1], [1], [0], [0], [0, 0, 1, 0], [], []>} : vector<32x64xf32>, vector<128x64xf32>, vector<32x128xf32> -> vector<32x128xf32>
    %c0_3 = arith.constant 0 : index
    %c0_4 = arith.constant 0 : index
    %7 = vector.load %arg6[%c0_3, %c0_4] : memref<72x1xf32, #tpu.memory_space<vmem>>, vector<32x1xf32>
    %8 = vector.broadcast %7 : vector<32x1xf32> to vector<32x128xf32>
    %9 = arith.addf %6, %8 : vector<32x128xf32>
    %cst_5 = arith.constant 0.000000e+00 : f32
    %10 = vector.broadcast %cst_5 : f32 to vector<32x128xf32>
    %11 = arith.maximumf %9, %10 : vector<32x128xf32>
    %c0_6 = arith.constant 0 : index
    %c0_7 = arith.constant 0 : index
    %12 = vector.load %arg3[%c0_6, %c0_7] : memref<16x32xf32, #tpu.memory_space<vmem>>, vector<16x32xf32>
    %cst_8 = arith.constant dense<0.000000e+00> : vector<16x128xf32>
    %13 = tpu.matmul %12, %11, %cst_8 {dimension_numbers = #tpu.dot_dimension_numbers<[1], [0], [0], [1], [0, 0, 1, 1], [], []>} : vector<16x32xf32>, vector<32x128xf32>, vector<16x128xf32> -> vector<16x128xf32>
    %c32 = arith.constant 32 : index
    %c0_9 = arith.constant 0 : index
    %14 = vector.load %arg6[%c32, %c0_9] : memref<72x1xf32, #tpu.memory_space<vmem>>, vector<16x1xf32>
    %15 = vector.broadcast %14 : vector<16x1xf32> to vector<16x128xf32>
    %16 = arith.addf %13, %15 : vector<16x128xf32>
    %cst_10 = arith.constant 0.000000e+00 : f32
    %17 = vector.broadcast %cst_10 : f32 to vector<16x128xf32>
    %18 = arith.maximumf %16, %17 : vector<16x128xf32>
    %c0_11 = arith.constant 0 : index
    %c0_12 = arith.constant 0 : index
    %19 = vector.load %arg4[%c0_11, %c0_12] : memref<8x16xf32, #tpu.memory_space<vmem>>, vector<8x16xf32>
    %cst_13 = arith.constant dense<0.000000e+00> : vector<8x128xf32>
    %20 = tpu.matmul %19, %18, %cst_13 {dimension_numbers = #tpu.dot_dimension_numbers<[1], [0], [0], [1], [0, 0, 1, 1], [], []>} : vector<8x16xf32>, vector<16x128xf32>, vector<8x128xf32> -> vector<8x128xf32>
    %c48 = arith.constant 48 : index
    %c0_14 = arith.constant 0 : index
    %21 = vector.load %arg6[%c48, %c0_14] : memref<72x1xf32, #tpu.memory_space<vmem>>, vector<8x1xf32>
    %22 = vector.broadcast %21 : vector<8x1xf32> to vector<8x128xf32>
    %23 = arith.addf %20, %22 : vector<8x128xf32>
    %cst_15 = arith.constant 0.000000e+00 : f32
    %24 = vector.broadcast %cst_15 : f32 to vector<8x128xf32>
    %25 = arith.maximumf %23, %24 : vector<8x128xf32>
    %c0_16 = arith.constant 0 : index
    %c0_17 = arith.constant 0 : index
    %26 = vector.load %arg5[%c0_16, %c0_17] : memref<1x8xf32, #tpu.memory_space<vmem>>, vector<1x8xf32>
    %cst_18 = arith.constant dense<0.000000e+00> : vector<1x128xf32>
    %27 = tpu.matmul %26, %4, %cst_18 {dimension_numbers = #tpu.dot_dimension_numbers<[1], [1], [0], [0], [0, 0, 1, 0], [], []>} : vector<1x8xf32>, vector<128x8xf32>, vector<1x128xf32> -> vector<1x128xf32>
    %c56 = arith.constant 56 : index
    %c0_19 = arith.constant 0 : index
    %28 = vector.load %arg6[%c56, %c0_19] : memref<72x1xf32, #tpu.memory_space<vmem>>, vector<8x1xf32>
    %29 = vector.broadcast %28 : vector<8x1xf32> to vector<8x128xf32>
    %30 = arith.mulf %25, %29 : vector<8x128xf32>
    %cst_20 = arith.constant dense<0.000000e+00> : vector<128xf32>
    %31 = vector.multi_reduction <add>, %30, %cst_20 [0] : vector<8x128xf32> to vector<128xf32>
    %32 = vector.shape_cast %31 : vector<128xf32> to vector<1x128xf32>
    %33 = arith.addf %27, %32 : vector<1x128xf32>
    %c64 = arith.constant 64 : index
    %c0_21 = arith.constant 0 : index
    %34 = vector.load %arg6[%c64, %c0_21] : memref<72x1xf32, #tpu.memory_space<vmem>>, vector<1x1xf32>
    %35 = vector.broadcast %34 : vector<1x1xf32> to vector<1x128xf32>
    %36 = arith.addf %33, %35 : vector<1x128xf32>
    %c0_22 = arith.constant 0 : index
    %c0_23 = arith.constant 0 : index
    %37 = vector.load %arg7[%c0_22, %c0_23] : memref<1x128xf32, #tpu.memory_space<vmem>>, vector<1x128xf32>
    tpu.vector_store %arg7[%c0_22, %c0_23], %36 {strides = array<i32>} : memref<1x128xf32, #tpu.memory_space<vmem>>, vector<1x128xf32>,
    return
  }
  func.func @transform_0(%arg0: i32) -> (i32, i32) {
    %c0_i32 = arith.constant 0 : i32
    %c0_i32_0 = arith.constant 0 : i32
    return %arg0, %c0_i32 : i32, i32
  }
  func.func @transform_1(%arg0: i32) -> (i32, i32) {
    %c0_i32 = arith.constant 0 : i32
    %c0_i32_0 = arith.constant 0 : i32
    %c0_i32_1 = arith.constant 0 : i32
    return %c0_i32, %c0_i32_0 : i32, i32
  }
  func.func @transform_2(%arg0: i32) -> (i32, i32) {
    %c0_i32 = arith.constant 0 : i32
    %c0_i32_0 = arith.constant 0 : i32
    %c0_i32_1 = arith.constant 0 : i32
    return %c0_i32, %c0_i32_0 : i32, i32
  }
  func.func @transform_3(%arg0: i32) -> (i32, i32) {
    %c0_i32 = arith.constant 0 : i32
    %c0_i32_0 = arith.constant 0 : i32
    %c0_i32_1 = arith.constant 0 : i32
    return %c0_i32, %c0_i32_0 : i32, i32
  }
  func.func @transform_4(%arg0: i32) -> (i32, i32) {
    %c0_i32 = arith.constant 0 : i32
    %c0_i32_0 = arith.constant 0 : i32
    %c0_i32_1 = arith.constant 0 : i32
    return %c0_i32, %c0_i32_0 : i32, i32
  }
  func.func @transform_5(%arg0: i32) -> (i32, i32) {
    %c0_i32 = arith.constant 0 : i32
    %c0_i32_0 = arith.constant 0 : i32
    %c0_i32_1 = arith.constant 0 : i32
    return %c0_i32, %c0_i32_0 : i32, i32
  }
  func.func @transform_6(%arg0: i32) -> (i32, i32) {
    %c0_i32 = arith.constant 0 : i32
    %c0_i32_0 = arith.constant 0 : i32
    return %c0_i32, %arg0 : i32, i32
  }
}

</mosaic_0001>

<bundles_post_ra>
// kernel: ncf_forward.1
= control target key start
LH: loop header
LB: loop body
LE: loop exit
PB: predicated region body
PF: predicated region fallthrough
CT: control target
= control target key end

     0   :  { %s957_s13 = smov 112   ;;  %vm179_vm0 = vcmask 523264   ;;  %v958_v25 = vmov 0   ;;  %s959_s19 = smov 120   ;;  %vm327_vm2 = vcmask 261120   ;;  %vm961_vm3 = vmmov 0   ;;  %s1258_s0 = inlined_call_operand.vmem [shape: f32[128,80], index: 0, kind: input, shape index: {}]   ;;  %s1259_s1 = inlined_call_operand.vmem [shape: f32[32,64], index: 1, kind: input, shape index: {}]   ;;  %s1260_s5 = inlined_call_operand.vmem [shape: f32[72,1], index: 5, kind: input, shape index: {}]   ;;  %s1261_s2 = inlined_call_operand.vmem [shape: f32[16,32], index: 2, kind: input, shape index: {}]   ;;  %s1262_s3 = inlined_call_operand.vmem [shape: f32[8,16], index: 3, kind: input, shape index: {}]   ;;  %s1263_s4 = inlined_call_operand.vmem [shape: f32[1,8], index: 4, kind: input, shape index: {}]   ;;  %s1264_s6 = inlined_call_operand.vmem [shape: f32[1,128], index: 6, kind: output, shape index: {}]  }
   0x1   :  { %v1001_v0 = vld [vmem:[%s1258_s0] sm:$0xff]  ;;  %v1006_v1 = vld [vmem:[%s1258_s0 + $0x8] sm:$0xff]  ;;  %v1011_v2 = vld [vmem:[%s1258_s0 + $0x10] sm:$0xff]  ;;  %956 = vset.pattern.permute.xlu1 %v958_v25  ;;  %955 = vset.pattern.permute.xlu0 %v958_v25  ;;  %vm418_vm4 = vcmask 130048   ;;  %vm507_vm5 = vcmask 64512  }
   0x2   :  { %v915_v3 = vpack.i.bf16 %v1006_v1, %v1001_v0  ;;  %v1018_v4 = vld [vmem:[%s1258_s0 + $0x18] sm:$0xff]  ;;  %v1023_v5 = vld [vmem:[%s1258_s0 + $0x20] sm:$0xff]  ;;  %v1028_v6 = vld [vmem:[%s1258_s0 + $0x28] sm:$0xff] }
   0x3   :  { %v925_v7 = vpack.i.bf16 %v1028_v6, %v1023_v5  ;;  %v1035_v8 = vld [vmem:[%s1258_s0 + $0x30] sm:$0xff]  ;;  %v1040_v9 = vld [vmem:[%s1258_s0 + $0x38] sm:$0xff]  ;;  %v920_v10 = vpack.i.bf16 %v1018_v4, %v1011_v2  ;;  %v1049_v12 = vld [vmem:[%s1258_s0 + $0x40] sm:$0xff] }
   0x4   :  { %916 = vrot.lane.b32.xlu0 %v915_v3, %s957_s13  ;;  %v930_v11 = vpack.i.bf16 %v1040_v9, %v1035_v8  ;;  %v1054_v13 = vld [vmem:[%s1258_s0 + $0x48] sm:$0xff]  ;;  %v1059_v14 = vld [vmem:[%s1258_s0 + $0x50] sm:$0xff]  ;;  %v1064_v15 = vld [vmem:[%s1258_s0 + $0x58] sm:$0xff] }
   0x5   :  { %926 = vrot.lane.b32.xlu1 %v925_v7, %s957_s13  ;;  %v935_v16 = vpack.i.bf16 %v1054_v13, %v1049_v12  ;;  %v940_v17 = vpack.i.bf16 %v1064_v15, %v1059_v14  ;;  %v1073_v18 = vld [vmem:[%s1258_s0 + $0x60] sm:$0xff]  ;;  %v1078_v19 = vld [vmem:[%s1258_s0 + $0x68] sm:$0xff]  ;;  %v1083_v20 = vld [vmem:[%s1258_s0 + $0x70] sm:$0xff] }
   0x6   :  { %v1088_v21 = vld [vmem:[%s1258_s0 + $0x78] sm:$0xff]  ;;  %v945_v22 = vpack.i.bf16 %v1078_v19, %v1073_v18  ;;  %v119_v24 = vld [vmem:[%s1259_s1] sm:$0xff]  ;;  %v124_v26 = vld [vmem:[%s1260_s5 + $0x8] sm:$0xff] }
   0x7   :  { %v950_v23 = vpack.i.bf16 %v1088_v21, %v1083_v20  ;;  %759 = vmatprep.mubr.msk.f32.mxu0 %vm179_vm0, %v119_v24  ;;  %v123_v27 = vld [vmem:[%s1260_s5] sm:$0xff]  ;;  %v125_v28 = vld [vmem:[%s1260_s5 + $0x10] sm:$0xff]  ;;  %v126_v29 = vld [vmem:[%s1260_s5 + $0x18] sm:$0xff] }
   0x8   :  { %921 = vrot.lane.b32.xlu0 %v920_v10, %s957_s13  ;;  %v315_v30 = vld [vmem:[%s1260_s5 + $0x20] sm:$0xff]  ;;  %v316_v31 = vld [vmem:[%s1260_s5 + $0x28] sm:$0xff]  ;;  %v412_v32 = vld [vmem:[%s1260_s5 + $0x30] sm:$0xff] }
   0x9   :  { %931 = vrot.lane.b32.xlu1 %v930_v11, %s957_s13  ;;  %v494_v33 = vld [vmem:[%s1260_s5 + $0x38] sm:$0xff]  ;;  %v629_v34 = vld [vmem:[%s1260_s5 + $0x40] sm:$0x1]  ;;  %vm1143_vm1 = vmpackc.low %vm179_vm0, %vm179_vm0 }
   0xa   :  { %vm1210_vm6 = vmpackc.low %vm507_vm5, %vm507_vm5 }
   0xc   :  { %936 = vrot.lane.b32.xlu0 %v935_v16, %s957_s13  ;;  %v120_v16 = vld [vmem:[%s1259_s1 + $0x8] sm:$0xff] }
   0xd   :  { %941 = vrot.lane.b32.xlu1 %v940_v17, %s957_s13  ;;  %v121_v17 = vld [vmem:[%s1259_s1 + $0x10] sm:$0xff] }
  0x10   :  { %946 = vrot.lane.b32.xlu0 %v945_v22, %s957_s13  ;;  %v122_v22 = vld [vmem:[%s1259_s1 + $0x18] sm:$0xff] }
  0x11   :  { %951 = vrot.lane.b32.xlu1 %v950_v23, %s957_s13  ;;  %v313_v23 = vld [vmem:[%s1261_s2] sm:$0xff] }
  0x14   :  { %129 = vperm.xlu0 %955, %v123_v27  }
  0x15   :  { %134 = vperm.xlu1 %956, %v124_v26  }
  0x18   :  { %144 = vperm.xlu0 %955, %v126_v29  }
  0x19   :  { %139 = vperm.xlu1 %956, %v125_v28  }
  0x1c   :  { %324 = vperm.xlu0 %955, %v316_v31  }
  0x1d   :  { %319 = vperm.xlu1 %956, %v315_v30  }
  0x20   :  { %57 = vrot.lane.b32.xlu0 %v1006_v1, %s959_s19 }
  0x21   :  { %55 = vrot.lane.b32.xlu1 %v1001_v0, %s959_s19 }
  0x24   :  { %61 = vrot.lane.b32.xlu0 %v1018_v4, %s959_s19 }
  0x25   :  { %59 = vrot.lane.b32.xlu1 %v1011_v2, %s959_s19 }
  0x28   :  { %65 = vrot.lane.b32.xlu0 %v1028_v6, %s959_s19 }
  0x29   :  { %63 = vrot.lane.b32.xlu1 %v1023_v5, %s959_s19 }
  0x2c   :  { %69 = vrot.lane.b32.xlu0 %v1040_v9, %s959_s19 }
  0x2d   :  { %67 = vrot.lane.b32.xlu1 %v1035_v8, %s959_s19 }
  0x30   :  { %73 = vrot.lane.b32.xlu0 %v1054_v13, %s959_s19 }
  0x31   :  { %71 = vrot.lane.b32.xlu1 %v1049_v12, %s959_s19 }
  0x34   :  { %77 = vrot.lane.b32.xlu0 %v1064_v15, %s959_s19 }
  0x35   :  { %75 = vrot.lane.b32.xlu1 %v1059_v14, %s959_s19 }
  0x38   :  { %81 = vrot.lane.b32.xlu0 %v1078_v19, %s959_s19 }
  0x39   :  { %79 = vrot.lane.b32.xlu1 %v1073_v18, %s959_s19 }
  0x3c   :  { %85 = vrot.lane.b32.xlu0 %v1088_v21, %s959_s19 }
  0x3d   :  { %83 = vrot.lane.b32.xlu1 %v1083_v20, %s959_s19 }
  0x40   :  { %497 = vperm.xlu0 %955, %v494_v33  }
  0x41   :  { %415 = vperm.xlu1 %956, %v412_v32  }
  0x45   :  { %632 = vperm.xlu1 %956, %v629_v34  }
  0x76   :  { %v917_v35 = vpop.permute.xlu0 %916 }
  0x77   :  { %v919_v36 = vunpack.i.h.bf16 %v917_v35  ;;  %v918_v37 = vunpack.i.l.bf16 %v917_v35  ;;  %v927_v41 = vpop.permute.xlu1 %926 }
  0x78   :  { %v929_v45 = vunpack.i.h.bf16 %v927_v41  ;;  %v928_v46 = vunpack.i.l.bf16 %v927_v41 }
  0x79   :  { %v818_v39 = vpack.c.bf16 %v919_v36, %v918_v37 }
  0x7a   :  { %v922_v40 = vpop.permute.xlu0 %921  ;;  %v830_v47 = vpack.c.bf16 %v929_v45, %v928_v46 }
  0x7b   :  { %820 = vmatprep.subr.msk.bf16.mxu0 %vm1143_vm1, %v818_v39  ;;  %v924_v42 = vunpack.i.h.bf16 %v922_v40  ;;  %v923_v43 = vunpack.i.l.bf16 %v922_v40  ;;  %v932_v48 = vpop.permute.xlu1 %931 }
  0x7c   :  { %823 = vmatpush3.bf16.xpose.msk.msra.mxu0 %vm1143_vm1, %v818_v39  ;;  %v934_v49 = vunpack.i.h.bf16 %v932_v48  ;;  %v933_v50 = vunpack.i.l.bf16 %v932_v48 }
  0x7d   :  { %v824_v44 = vpack.c.bf16 %v924_v42, %v923_v43  ;;  %v314_v42 = vld [vmem:[%s1261_s2 + $0x8] sm:$0xff]  ;;  %v960_v43 = vmov 0.0|0.0  }
  0x7e   :  { %v836_v51 = vpack.c.bf16 %v934_v49, %v933_v50  ;;  %v937_v52 = vpop.permute.xlu0 %936  ;;  %874 = vmatprep.subr.bf16.mxu1 %v960_v43 }
  0x7f   :  { %826 = vmatprep.subr.msk.bf16.mxu0 %vm1143_vm1, %v824_v44  ;;  %v939_v53 = vunpack.i.h.bf16 %v937_v52  ;;  %v938_v54 = vunpack.i.l.bf16 %v937_v52  ;;  %v942_v56 = vpop.permute.xlu1 %941 }
  0x80   :  { %v944_v57 = vunpack.i.h.bf16 %v942_v56  ;;  %v943_v58 = vunpack.i.l.bf16 %v942_v56  ;;  %v411_v56 = vld [vmem:[%s1262_s3] sm:$0xff] }
  0x81   :  { %v842_v55 = vpack.c.bf16 %v939_v53, %v938_v54 }
  0x82   :  { %v848_v59 = vpack.c.bf16 %v944_v57, %v943_v58  ;;  %v947_v60 = vpop.permute.xlu0 %946 }
  0x83   :  { %v949_v61 = vunpack.i.h.bf16 %v947_v60  ;;  %v948_v62 = vunpack.i.l.bf16 %v947_v60  ;;  %v952_v3 = vpop.permute.xlu1 %951 }
  0x84   :  { %829 = vmatpush3.bf16.xpose.msk.msra.mxu0 %vm1143_vm1, %v824_v44  ;;  %v954_v7 = vunpack.i.h.bf16 %v952_v3  ;;  %v953_v10 = vunpack.i.l.bf16 %v952_v3  ;;  %v962_v44 = vmov 0.0  }
  0x85   :  { %832 = vmatprep.subr.msk.bf16.mxu0 %vm1143_vm1, %v830_v47  ;;  %v854_v63 = vpack.c.bf16 %v949_v61, %v948_v62  ;;  %780 = vmatprep.mubr.msk.f32.mxu1 %vm961_vm3, %v962_v44 }
  0x86   :  { %v860_v11 = vpack.c.bf16 %v954_v7, %v953_v10 }
  0x8c   :  { %835 = vmatpush3.bf16.xpose.msk.msra.mxu0 %vm1143_vm1, %v830_v47 }
  0x8d   :  { %838 = vmatprep.subr.msk.bf16.mxu0 %vm1143_vm1, %v836_v51 }
  0x93   :  { %v130_v24 = vpop.permute.xlu0 %129 }
  0x94   :  { %841 = vmatpush3.bf16.xpose.msk.msra.mxu0 %vm1143_vm1, %v836_v51  ;;  %v135_v25 = vpop.permute.xlu1 %134 }
  0x95   :  { %844 = vmatprep.subr.msk.bf16.mxu0 %vm1143_vm1, %v842_v55 }
  0x97   :  { %v145_v31 = vpop.permute.xlu0 %144 }
  0x98   :  { %v140_v34 = vpop.permute.xlu1 %139 }
  0x9b   :  { %v325_v45 = vpop.permute.xlu0 %324 }
  0x9c   :  { %847 = vmatpush3.bf16.xpose.msk.msra.mxu0 %vm1143_vm1, %v842_v55  ;;  %v320_v47 = vpop.permute.xlu1 %319 }
  0x9d   :  { %850 = vmatprep.subr.msk.bf16.mxu0 %vm1143_vm1, %v848_v59 }
  0x9f   :  { %v58_v55 = vpop.permute.xlu0 %57 }
  0xa0   :  { %v56_v54 = vpop.permute.xlu1 %55  ;;  %v104_v58 = vmul.f32 %v58_v55, %v1006_v1 }
  0xa1   :  { %v103_v57 = vmul.f32 %v56_v54, %v1001_v0 }
  0xa3   :  { %v62_v62 = vpop.permute.xlu0 %61 }
  0xa4   :  { %853 = vmatpush3.bf16.xpose.msk.msra.mxu0 %vm1143_vm1, %v848_v59  ;;  %v878_v59 = vpack.c.bf16 %v104_v58, %v103_v57  ;;  %v60_v61 = vpop.permute.xlu1 %59  ;;  %v106_v0 = vmul.f32 %v62_v62, %v1018_v4 }
  0xa5   :  { %856 = vmatprep.subr.msk.bf16.mxu0 %vm1143_vm1, %v854_v63 }
  0xa7   :  { %v66_v7 = vpop.permute.xlu0 %65 }
  0xa8   :  { %v64_v3 = vpop.permute.xlu1 %63 }
  0xa9   :  { %v107_v10 = vmul.f32 %v64_v3, %v1023_v5 }
  0xab   :  { %v70_v4 = vpop.permute.xlu0 %69 }
  0xac   :  { %859 = vmatpush3.bf16.xpose.msk.msra.mxu0 %vm1143_vm1, %v854_v63  ;;  %v105_v63 = vmul.f32 %v60_v61, %v1011_v2 }
  0xad   :  { %862 = vmatprep.subr.msk.bf16.mxu0 %vm1143_vm1, %v860_v11 }
  0xae   :  { %v882_v1 = vpack.c.bf16 %v106_v0, %v105_v63 }
  0xb4   :  { %865 = vmatpush3.bf16.xpose.msk.msra.mxu0 %vm1143_vm1, %v860_v11  ;;  %v108_v11 = vmul.f32 %v66_v7, %v1028_v6  ;;  %v74_v6 = vpop.permute.xlu0 %73 }
  0xb6   :  { %v886_v2 = vpack.c.bf16 %v108_v11, %v107_v10 }
  0xbb   :  { %760 = vmatmul.mubr.msk.f32.vlgmr.msra.gmra.mrb[0].mxu0 %vm179_vm0, %v120_v16  ;;  %v68_v16 = vpop.permute.xlu1 %67 }
  0xbc   :  { %762 = vmatprep.mubr.msk.f32.mxu0 %vm179_vm0, %v121_v17  ;;  %v109_v17 = vmul.f32 %v68_v16, %v1035_v8 }
  0xbf   :  { %763 = vmatmul.mubr.msk.f32.gmra.mrb[2].mxu0 %vm179_vm0, %v122_v22  ;;  %v110_v22 = vmul.f32 %v70_v4, %v1040_v9  ;;  %v78_v9 = vpop.permute.xlu0 %77 }
  0xc0   :  { %773 = vmatprep.mubr.msk.f32.mxu0 %vm327_vm2, %v313_v23  ;;  %v72_v23 = vpop.permute.xlu1 %71 }
  0xc1   :  { %v890_v5 = vpack.c.bf16 %v110_v22, %v109_v17 }
 0x18e   :  { %v761_v26 = vpop.f32.mrb[0].mxu0 }
 0x18f   :  { %v296_v27 = vadd.f32 %v761_v26, %v135_v25  ;;  %v290_v28 = vpop.f32.mrb[1].mxu0  ;;  %v112_v25 = vmul.f32 %v74_v6, %v1054_v13  ;;  %v76_v26 = vpop.permute.xlu1 %75 }
 0x190   :  { %v291_v29 = vadd.f32 %v290_v28, %v130_v24  ;;  %v111_v24 = vmul.f32 %v72_v23, %v1049_v12  ;;  %v114_v28 = vmul.f32 %v78_v9, %v1064_v15  ;;  %v82_v13 = vpop.permute.xlu0 %81 }
 0x191   :  { %v310_v30 = vmax.f32 %v296_v27, 0.0  ;;  %v113_v27 = vmul.f32 %v76_v26, %v1059_v14 }
 0x192   :  { %v309_v32 = vmax.f32 %v291_v29, 0.0  ;;  %v764_v33 = vpop.f32.mrb[2].mxu0  ;;  %v894_v8 = vpack.c.bf16 %v112_v25, %v111_v24 }
 0x193   :  { %v306_v35 = vadd.f32 %v764_v33, %v145_v31  ;;  %v300_v36 = vpop.f32.mrb[3].mxu0  ;;  %v898_v12 = vpack.c.bf16 %v114_v28, %v113_v27  ;;  %v80_v29 = vpop.permute.xlu1 %79  ;;  %v116_v31 = vmul.f32 %v82_v13, %v1078_v19  ;;  %v493_v19 = vld [vmem:[%s1263_s4] sm:$0x1] }
 0x194   :  { %v866_v37 = vpack.c.bf16 %v310_v30, %v309_v32  ;;  %v301_v38 = vadd.f32 %v300_v36, %v140_v34  ;;  %v115_v30 = vmul.f32 %v80_v29, %v1073_v18  ;;  %v86_v15 = vpop.permute.xlu0 %85 }
 0x195   :  { %v312_v39 = vmax.f32 %v306_v35, 0.0  ;;  %v118_v34 = vmul.f32 %v86_v15, %v1088_v21 }
 0x196   :  { %v311_v40 = vmax.f32 %v301_v38, 0.0  ;;  %867 = vmatprep.subr.bf16.mxu0 %v866_v37  ;;  %v902_v14 = vpack.c.bf16 %v116_v31, %v115_v30 }
 0x197   :  { %869 = vmatpush3.bf16.msra.mxu0 %v866_v37  ;;  %v84_v32 = vpop.permute.xlu1 %83 }
 0x198   :  { %v870_v41 = vpack.c.bf16 %v312_v39, %v311_v40  ;;  %v117_v33 = vmul.f32 %v84_v32, %v1083_v20  ;;  %v498_v38 = vpop.permute.xlu0 %497 }
 0x19a   :  { %871 = vmatprep.subr.bf16.mxu0 %v870_v41  ;;  %v906_v18 = vpack.c.bf16 %v118_v34, %v117_v33 }
 0x19b   :  { %873 = vmatpush3.bf16.msra.mxu0 %v870_v41  ;;  %v416_v20 = vpop.permute.xlu1 %415 }
 0x19e   :  { %774 = vmatmul.mubr.msk.f32.vlgmr.msra.gmra.mrb[4].mxu0 %vm327_vm2, %v314_v42 }
 0x271   :  { %v775_v46 = vpop.f32.mrb[4].mxu0 }
 0x272   :  { %v406_v48 = vadd.f32 %v775_v46, %v325_v45  ;;  %v400_v49 = vpop.f32.mrb[5].mxu0 }
 0x273   :  { %v401_v50 = vadd.f32 %v400_v49, %v320_v47  ;;  %v633_v49 = vpop.permute.xlu1 %632 }
 0x274   :  { %v410_v51 = vmax.f32 %v406_v48, 0.0 }
 0x275   :  { %v409_v52 = vmax.f32 %v401_v50, 0.0 }
 0x277   :  { %v875_v53 = vpack.c.bf16 %v410_v51, %v409_v52 }
 0x279   :  { %876 = vmatpush3.bf16.msra.mxu1 %v875_v53 }
 0x27a   :  { %877 = vmatprep.subr.bf16.mxu1 %v960_v43 }
 0x27c   :  { %781 = vmatmul.mubr.msk.f32.vlgmr.msra.gmra.mrb[0].mxu1 %vm418_vm4, %v411_v56 }
 0x27d   :  { %815 = vmatprep.mubr.msk.f32.mxu1 %vm961_vm3, %v962_v44 }
 0x282   :  { %880 = vmatpush3.bf16.xpose.msk.msra.mxu1 %vm1210_vm6, %v878_v59 }
 0x283   :  { %881 = vmatprep.subr.bf16.mxu1 %v960_v43 }
 0x28a   :  { %884 = vmatpush3.bf16.xpose.msk.msra.mxu1 %vm1210_vm6, %v882_v1 }
 0x28b   :  { %885 = vmatprep.subr.bf16.mxu1 %v960_v43 }
 0x292   :  { %888 = vmatpush3.bf16.xpose.msk.msra.mxu1 %vm1210_vm6, %v886_v2 }
 0x293   :  { %889 = vmatprep.subr.bf16.mxu1 %v960_v43 }
 0x29a   :  { %892 = vmatpush3.bf16.xpose.msk.msra.mxu1 %vm1210_vm6, %v890_v5 }
 0x29b   :  { %893 = vmatprep.subr.bf16.mxu1 %v960_v43 }
 0x2a2   :  { %896 = vmatpush3.bf16.xpose.msk.msra.mxu1 %vm1210_vm6, %v894_v8 }
 0x2a3   :  { %897 = vmatprep.subr.bf16.mxu1 %v960_v43 }
 0x2aa   :  { %900 = vmatpush3.bf16.xpose.msk.msra.mxu1 %vm1210_vm6, %v898_v12 }
 0x2ab   :  { %901 = vmatprep.subr.bf16.mxu1 %v960_v43 }
 0x2b2   :  { %904 = vmatpush3.bf16.xpose.msk.msra.mxu1 %vm1210_vm6, %v902_v14 }
 0x2b3   :  { %905 = vmatprep.subr.bf16.mxu1 %v960_v43 }
 0x2ba   :  { %908 = vmatpush3.bf16.xpose.msk.msra.mxu1 %vm1210_vm6, %v906_v18 }
 0x2c1   :  { %816 = vmatmul.mubr.msk.f32.vlgmr.msra.gmra.mrb[2].mxu1 %vm507_vm5, %v493_v19 }
 0x34f   :  { %v488_v35 = vpop.f32.mrb[0].mxu1 }
 0x350   :  { %v782_v36 = vpop.f32.mrb[1].mxu1  ;;  %v489_v37 = vadd.f32 %v488_v35, %v416_v20 }
 0x352   :  { %v492_v21 = vmax.f32 %v489_v37, 0.0 }
 0x354   :  { %v500_v39 = vmul.f32 %v498_v38, %v492_v21 }
 0x356   :  { %v501_v40 = vrot.slane %v500_v39, 4 }
 0x358   :  { %v502_v41 = vadd.f32 %v501_v40, %v500_v39 }
 0x35a   :  { %v503_v42 = vrot.slane %v502_v41, 2 }
 0x35c   :  { %v504_v43 = vadd.f32 %v503_v42, %v502_v41 }
 0x35e   :  { %v505_v44 = vrot.slane %v504_v43, 1 }
 0x360   :  { %v506_v45 = vadd.f32 %v505_v44, %v504_v43 }
 0x394   :  { %v625_v46 = vpop.f32.mrb[2].mxu1 }
 0x395   :  { %v626_v47 = vadd.f32 %v625_v46, %v506_v45  ;;  %v817_v48 = vpop.f32.mrb[3].mxu1 }
 0x397   :  { %v635_v50 = vadd.f32 %v633_v49, %v626_v47 }
 0x399   :  { %636 = vst [vmem:[%s1264_s6] sm:$0x1] %v635_v50 }

</bundles_post_ra>
